<compile_context>
chip_gen: v6e
topology: v6e:2x2x1
jax: 0.10.0
libtpu: 0.0.40
codegen_flags: <defaults>
</compile_context>

<pallas_src>
import jax
import jax.numpy as jnp
from jax.experimental import pallas as pl
from jax.experimental.pallas import tpu as pltpu

D_MODEL = 512
VOCAB = 18
VOCAB_PAD = 128  # pad vocab to one full lane group -> lane-dense stores


def _decoder_head_kernel(x_ref, w_ref, b_ref, o_ref):
    # x_ref: (TM, D_MODEL) producer-dtype tile of hidden states (f32 or bf16)
    # w_ref: (D_MODEL, VOCAB_PAD) bf16 weight, zero-padded cols >= VOCAB (resident)
    # b_ref: (1, VOCAB_PAD) f32 bias, -inf for cols >= VOCAB (resident)
    # o_ref: (TM, VOCAB_PAD) f32 log-probabilities (padded cols come out -inf)
    x = x_ref[...].astype(jnp.bfloat16)  # in-kernel cast: free on VPU, no HBM pass
    logits = jnp.dot(x, w_ref[...],
                     preferred_element_type=jnp.float32) + b_ref[...]
    # numerically-stable log_softmax along the lane (vocab) axis, all in f32.
    # Padded columns: logits = 0 + (-inf) = -inf -> exp = 0 -> normalizer only
    # sees the 18 real columns; their outputs are -inf and sliced off outside.
    m = jnp.max(logits, axis=-1, keepdims=True)
    shifted = logits - m
    lse = jnp.log(jnp.sum(jnp.exp(shifted), axis=-1, keepdims=True))
    o_ref[...] = (shifted - lse).astype(o_ref.dtype)


def _row_tiling(rows, tm_max):
    """Balanced row tile: split rows into cdiv(rows, tm_max) near-equal tiles
    (rounded up to the 8-row f32 sublane granule). If more than one grid step is
    needed, use an even step count so both v7x TensorCores get equal work."""
    align = 8
    num_tiles = pl.cdiv(rows, tm_max)
    if num_tiles > 1 and num_tiles % 2 == 1:
        num_tiles += 1
    tm = pl.cdiv(rows, num_tiles)
    tm = ((tm + align - 1) // align) * align
    grid_m = pl.cdiv(rows, tm)
    return tm, grid_m


def decoder_head(hiddens, weight, bias, *, tm_max=4096):
    """hiddens: (B, T, D_MODEL); weight: (D_MODEL, VOCAB); bias: (VOCAB,)."""
    B, T, D = hiddens.shape
    assert D == D_MODEL
    rows = B * T

    # Pure reshape — no cast, no pad, no extra HBM pass over the activations.
    x2d = hiddens.reshape(rows, D)
    x_bytes = jnp.dtype(hiddens.dtype).itemsize

    # One-time (tiny) parameter prep: pad vocab 18 -> 128 lanes.
    #   W[:, 18:] = 0 and bias[18:] = -inf  =>  padded logits are exactly -inf,
    #   so no in-kernel lane mask is needed and the softmax is unchanged.
    w_p = jnp.zeros((D_MODEL, VOCAB_PAD), jnp.bfloat16)
    w_p = w_p.at[:, :VOCAB].set(weight.astype(jnp.bfloat16))
    b_p = jnp.full((1, VOCAB_PAD), -jnp.inf, dtype=jnp.float32)
    b_p = b_p.at[0, :VOCAB].set(bias.astype(jnp.float32))

    tm, grid_m = _row_tiling(rows, tm_max)

    cost = pl.CostEstimate(
        flops=2 * rows * D_MODEL * VOCAB_PAD,
        transcendentals=rows * VOCAB_PAD,
        bytes_accessed=(rows * (D_MODEL * x_bytes + VOCAB_PAD * 4)
                        + D_MODEL * VOCAB_PAD * 2 + VOCAB_PAD * 4),
    )

    out_p = pl.pallas_call(
        _decoder_head_kernel,
        out_shape=jax.ShapeDtypeStruct((rows, VOCAB_PAD), jnp.float32),
        grid_spec=pltpu.PrefetchScalarGridSpec(
            num_scalar_prefetch=0,
            grid=(grid_m,),
            in_specs=[
                pl.BlockSpec((tm, D_MODEL), lambda i: (i, 0)),        # x tile
                pl.BlockSpec((D_MODEL, VOCAB_PAD), lambda i: (0, 0)),  # W (resident)
                pl.BlockSpec((1, VOCAB_PAD), lambda i: (0, 0)),        # bias (resident)
            ],
            out_specs=pl.BlockSpec((tm, VOCAB_PAD), lambda i: (i, 0)),
        ),
        compiler_params=pltpu.CompilerParams(
            dimension_semantics=("parallel",),
            # Footprint at tm=4096 (f32 x, double-buffered x/out + resident W):
            # ~21 MiB — under this limit on every generation incl. v7x (64 MiB).
            vmem_limit_bytes=40 * 1024 * 1024,
        ),
        cost_estimate=cost,
    )(x2d, w_p, b_p)

    # Drop the padded vocab lanes (padded entries are -inf). In a real model the
    # downstream loss/argmax would fuse with / replace this slice.
    return out_p[:, :VOCAB].reshape(B, T, VOCAB)


def _reference(hiddens, weight, bias):
    logits = jnp.einsum("btd,dv->btv", hiddens, weight) + bias
    return jax.nn.log_softmax(logits, axis=-1)


if __name__ == "__main__":
    key = jax.random.PRNGKey(0)
    k_h, k_w, k_b = jax.random.split(key, 3)

    B, T = 2, 8  # small sequence of decoder hidden states
    hiddens = jax.random.normal(k_h, (B, T, D_MODEL), dtype=jnp.float32)

    # Deterministic parameter init (nn.Linear-style uniform bound 1/sqrt(d_model))
    bound = 1.0 / (D_MODEL ** 0.5)
    weight = jax.random.uniform(k_w, (D_MODEL, VOCAB), jnp.float32, -bound, bound)
    bias = jax.random.uniform(k_b, (VOCAB,), jnp.float32, -bound, bound)

    probs = decoder_head(hiddens, weight, bias)
    probs = jax.block_until_ready(probs)

    ref_f32 = _reference(hiddens, weight, bias)
    # bf16-consistent reference (same precision path as the kernel's MXU inputs)
    ref_bf16 = _reference(hiddens.astype(jnp.bfloat16).astype(jnp.float32),
                          weight.astype(jnp.bfloat16).astype(jnp.float32),
                          bias)

    assert probs.shape == (B, T, VOCAB)
    assert bool(jnp.all(jnp.isfinite(probs)))
    assert jnp.allclose(probs, ref_bf16, atol=2e-3, rtol=1e-3)
    assert jnp.allclose(probs, ref_f32, atol=2e-2, rtol=2e-2)

    print("KERNEL_OK")
</pallas_src>

<mosaic_0001>
module attributes {stable_mosaic.version = 11 : i64} {
  func.func @_decoder_head_kernel(%arg0: i32, %arg1: memref<16x512xf32, #tpu.memory_space<vmem>>, %arg2: memref<512x128xbf16, #tpu.memory_space<vmem>>, %arg3: memref<1x128xf32, #tpu.memory_space<vmem>>, %arg4: memref<16x128xf32, #tpu.memory_space<vmem>>) attributes {dimension_semantics = [#tpu.dimension_semantics<parallel>], iteration_bounds = array<i64: 1>, scalar_prefetch = 0 : i64, scratch_operands = 0 : i64, tpu.core_type = #tpu.core_type<tc>, window_params = [{transform_indices = @transform_0, window_bounds = array<i64: 16, 512>}, {pipeline_mode = #tpu.pipeline_mode<synchronous>, transform_indices = @transform_1, window_bounds = array<i64: 512, 128>}, {pipeline_mode = #tpu.pipeline_mode<synchronous>, transform_indices = @transform_2, window_bounds = array<i64: 1, 128>}, {transform_indices = @transform_3, window_bounds = array<i64: 16, 128>}]} {
    %c0 = arith.constant 0 : index
    %c0_0 = arith.constant 0 : index
    %0 = vector.load %arg1[%c0, %c0_0] : memref<16x512xf32, #tpu.memory_space<vmem>>, vector<16x512xf32>
    %1 = arith.truncf %0 : vector<16x512xf32> to vector<16x512xbf16>
    %c0_1 = arith.constant 0 : index
    %c0_2 = arith.constant 0 : index
    %2 = vector.load %arg2[%c0_1, %c0_2] : memref<512x128xbf16, #tpu.memory_space<vmem>>, vector<512x128xbf16>
    %cst = arith.constant dense<0.000000e+00> : vector<16x128xf32>
    %3 = tpu.matmul %1, %2, %cst {dimension_numbers = #tpu.dot_dimension_numbers<[1], [0], [0], [1], [0, 0, 1, 1], [], []>} : vector<16x512xbf16>, vector<512x128xbf16>, vector<16x128xf32> -> vector<16x128xf32>
    %c0_3 = arith.constant 0 : index
    %c0_4 = arith.constant 0 : index
    %4 = vector.load %arg3[%c0_3, %c0_4] : memref<1x128xf32, #tpu.memory_space<vmem>>, vector<1x128xf32>
    %5 = vector.broadcast %4 : vector<1x128xf32> to vector<16x128xf32>
    %6 = arith.addf %3, %5 : vector<16x128xf32>
    %cst_5 = arith.constant dense<0xFF800000> : vector<16xf32>
    %7 = vector.multi_reduction <maximumf>, %6, %cst_5 [1] : vector<16x128xf32> to vector<16xf32>
    %8 = vector.shape_cast %7 : vector<16xf32> to vector<16x1xf32>
    %9 = vector.broadcast %8 : vector<16x1xf32> to vector<16x128xf32>
    %10 = arith.subf %6, %9 : vector<16x128xf32>
    %11 = math.exp %10 : vector<16x128xf32>
    %cst_6 = arith.constant dense<0.000000e+00> : vector<16xf32>
    %12 = vector.multi_reduction <add>, %11, %cst_6 [1] : vector<16x128xf32> to vector<16xf32>
    %13 = vector.shape_cast %12 : vector<16xf32> to vector<16x1xf32>
    %14 = math.log %13 : vector<16x1xf32>
    %15 = vector.broadcast %14 : vector<16x1xf32> to vector<16x128xf32>
    %16 = arith.subf %10, %15 : vector<16x128xf32>
    %c0_7 = arith.constant 0 : index
    %c0_8 = arith.constant 0 : index
    %17 = vector.load %arg4[%c0_7, %c0_8] : memref<16x128xf32, #tpu.memory_space<vmem>>, vector<16x128xf32>
    tpu.vector_store %arg4[%c0_7, %c0_8], %16 {strides = array<i32>} : memref<16x128xf32, #tpu.memory_space<vmem>>, vector<16x128xf32>,
    return
  }
  func.func @transform_0(%arg0: i32) -> (i32, i32) {
    %c0_i32 = arith.constant 0 : i32
    %c0_i32_0 = arith.constant 0 : i32
    return %arg0, %c0_i32 : i32, i32
  }
  func.func @transform_1(%arg0: i32) -> (i32, i32) {
    %c0_i32 = arith.constant 0 : i32
    %c0_i32_0 = arith.constant 0 : i32
    %c0_i32_1 = arith.constant 0 : i32
    return %c0_i32, %c0_i32_0 : i32, i32
  }
  func.func @transform_2(%arg0: i32) -> (i32, i32) {
    %c0_i32 = arith.constant 0 : i32
    %c0_i32_0 = arith.constant 0 : i32
    %c0_i32_1 = arith.constant 0 : i32
    return %c0_i32, %c0_i32_0 : i32, i32
  }
  func.func @transform_3(%arg0: i32) -> (i32, i32) {
    %c0_i32 = arith.constant 0 : i32
    %c0_i32_0 = arith.constant 0 : i32
    return %arg0, %c0_i32 : i32, i32
  }
}

</mosaic_0001>

<bundles_post_ra>
// kernel: tpu_custom_call.1
= control target key start
LH: loop header
LB: loop body
LE: loop exit
PB: predicated region body
PF: predicated region fallthrough
CT: control target
= control target key end

     0   :  { %8 = vsyncpa [#allocation3], 0  ;;  %s674_s0 = inlined_call_operand.hbm [shape: f32[16,512], index: 0, kind: input, shape index: {}]   ;;  %s675_s1 = inlined_call_operand.hbm [shape: bf16[512,128], index: 1, kind: input, shape index: {}]   ;;  %s676_s2 = inlined_call_operand.vmem [shape: f32[1,128], index: 2, kind: input, shape index: {}]   ;;  %s677_s3 = inlined_call_operand.hbm [shape: f32[16,128], index: 3, kind: output, shape index: {}]  }
   0x1   :  { %9 = vsyncpa [#allocation6], 0 }
   0x2   :  { %10 = vsyncpa [#allocation4], 0  ;;  %s633_s12 = smov [#allocation2]  }
   0x3   :  { %s16_s13 = sshll.u32 %s633_s12, 4  ;;  %s17_s13 = int_to_ptr.vmem [resolvable:$true] %s16_s13 }
   0x4   :  { %s575_s14 = scalar_lea.vmem %s17_s13, 1024  ;;  %p580_p1 = scmp.lt.s32.totalorder %s17_s13, %s17_s13 }
   0x5   :  { %p576_p0 = scmp.ne.s32.totalorder %s17_s13, %s575_s14  ;;  %p581_p2 = scmp.lt.s32.totalorder %s575_s14, %s575_s14 }
   0x7   :  { %p582_p3 = por %p581_p2, %p580_p1 }
   0x9   :  { %p583_p4 = pnand %p582_p3, %p576_p0 }
   0xb   :  { %586 = shalt.err (!%p583_p4)
}
   0xc   :  { %s634_s15 = smov 512   ;;  %s635_s16 = smov 32  }
   0xd   :  { %22 = dma.hbm_to_vmem [thread:$0]  %s674_s0, 1024, %s17_s13, [#allocation3], %s634_s15, %s634_s15, %s635_s16  }
   0xe   :  { %s636_s19 = smov [#allocation5]  }
   0xf   :  { %s28_s20 = sshll.u32 %s636_s19, 4  ;;  %s29_s20 = int_to_ptr.vmem [resolvable:$true] %s28_s20 }
  0x10   :  { %s595_s21 = scalar_lea.vmem %s29_s20, 4096  ;;  %p600_p6 = scmp.lt.s32.totalorder %s29_s20, %s29_s20 }
  0x11   :  { %p596_p5 = scmp.ne.s32.totalorder %s29_s20, %s595_s21  ;;  %p601_p7 = scmp.lt.s32.totalorder %s595_s21, %s595_s21 }
  0x13   :  { %p602_p8 = por %p601_p7, %p600_p6 }
  0x15   :  { %p603_p9 = pnand %p602_p8, %p596_p5 }
  0x17   :  { %606 = shalt.err (!%p603_p9)
}
  0x18   :  { %s637_s22 = smov 64   ;;  %s638_s23 = smov 4  }
  0x19   :  { %34 = dma.hbm_to_vmem [thread:$0]  %s675_s1, 4096, %s29_s20, [#allocation6], %s637_s22, %s637_s22, %s638_s23  }
  0x1a   :  { %627 = dma.done.wait [#allocation3], 1024  }
  0x1b   :  { %628 = vsyncadd [#allocation3], 4294966272 }
  0x1c   :  { %629 = dma.done.wait [#allocation6], 4096  }
  0x1d   :  { %630 = vsyncadd [#allocation6], 4294963200  ;;  %v527_v0 = vld [vmem:[#allocation5 + $0x78] sm:$0xff]   ;;  %v531_v4 = vld [vmem:[#allocation5 + $0x70] sm:$0xff]  }
  0x1e   :  { %v528_v1 = vld [vmem:[#allocation5 + $0xf8] sm:$0xff]   ;;  %474 = vmatprep.subr.bf16.mxu0 %v527_v0  ;;  %v532_v5 = vld [vmem:[#allocation5 + $0xf0] sm:$0xff]   ;;  %v535_v8 = vld [vmem:[#allocation5 + $0x68] sm:$0xff]  }
  0x1f   :  { %v529_v2 = vld [vmem:[#allocation5 + $0x38] sm:$0xff]   ;;  %496 = vmatprep.subr.bf16.mxu1 %v528_v1  ;;  %v533_v6 = vld [vmem:[#allocation5 + $0x30] sm:$0xff]   ;;  %v536_v9 = vld [vmem:[#allocation5 + $0xe8] sm:$0xff]  }
  0x20   :  { %v530_v3 = vld [vmem:[#allocation5 + $0xb8] sm:$0xff]   ;;  %475 = vmatpush3.bf16.msra.mxu0 %v529_v2  ;;  %v534_v7 = vld [vmem:[#allocation5 + $0xb0] sm:$0xff]   ;;  %v537_v10 = vld [vmem:[#allocation5 + $0x28] sm:$0xff]  }
  0x21   :  { %497 = vmatpush3.bf16.msra.mxu1 %v530_v3  ;;  %476 = vmatprep.subr.bf16.mxu0 %v531_v4  ;;  %v538_v11 = vld [vmem:[#allocation5 + $0xa8] sm:$0xff]   ;;  %v539_v12 = vld [vmem:[#allocation5 + $0x60] sm:$0xff]   ;;  %v543_v16 = vld [vmem:[#allocation5 + $0x58] sm:$0xff]  }
  0x22   :  { %498 = vmatprep.subr.bf16.mxu1 %v532_v5  ;;  %v540_v13 = vld [vmem:[#allocation5 + $0xe0] sm:$0xff]   ;;  %v544_v17 = vld [vmem:[#allocation5 + $0xd8] sm:$0xff]   ;;  %v547_v20 = vld [vmem:[#allocation5 + $0x50] sm:$0xff]  }
  0x23   :  { %v541_v14 = vld [vmem:[#allocation5 + $0x20] sm:$0xff]   ;;  %v545_v18 = vld [vmem:[#allocation5 + $0x18] sm:$0xff]   ;;  %v548_v21 = vld [vmem:[#allocation5 + $0xd0] sm:$0xff]  }
  0x24   :  { %477 = vmatpush3.bf16.msra.mxu0 %v533_v6  ;;  %v542_v15 = vld [vmem:[#allocation5 + $0xa0] sm:$0xff]   ;;  %v546_v19 = vld [vmem:[#allocation5 + $0x98] sm:$0xff]   ;;  %v549_v22 = vld [vmem:[#allocation5 + $0x10] sm:$0xff]  }
  0x25   :  { %499 = vmatpush3.bf16.msra.mxu1 %v534_v7  ;;  %478 = vmatprep.subr.bf16.mxu0 %v535_v8  ;;  %v550_v23 = vld [vmem:[#allocation5 + $0x90] sm:$0xff]   ;;  %v551_v24 = vld [vmem:[#allocation5 + $0x48] sm:$0xff]   ;;  %v555_v28 = vld [vmem:[#allocation5 + $0x40] sm:$0xff]  }
  0x26   :  { %500 = vmatprep.subr.bf16.mxu1 %v536_v9  ;;  %v552_v25 = vld [vmem:[#allocation5 + $0xc8] sm:$0xff]   ;;  %v556_v29 = vld [vmem:[#allocation5 + $0xc0] sm:$0xff]   ;;  %v47_v34 = vld [vmem:[#allocation2 + $0x18] sm:$0xff] }
  0x27   :  { %v553_v26 = vld [vmem:[#allocation5 + $0x8] sm:$0xff]   ;;  %v557_v30 = vld [vmem:[#allocation5] sm:$0xff]   ;;  %v51_v36 = vld [vmem:[#allocation2 + $0x38] sm:$0xff] }
  0x28   :  { %479 = vmatpush3.bf16.msra.mxu0 %v537_v10  ;;  %v554_v27 = vld [vmem:[#allocation5 + $0x88] sm:$0xff]   ;;  %v558_v31 = vld [vmem:[#allocation5 + $0x80] sm:$0xff]   ;;  %v55_v39 = vpack.c.bf16 %v51_v36, %v47_v34  ;;  %v46_v41 = vld [vmem:[#allocation2 + $0x10] sm:$0xff] }
  0x29   :  { %501 = vmatpush3.bf16.msra.mxu1 %v538_v11  ;;  %480 = vmatprep.subr.bf16.mxu0 %v539_v12  ;;  %v45_v32 = vld [vmem:[#allocation2 + $0x8] sm:$0xff]  ;;  %v44_v37 = vld [vmem:[#allocation2] sm:$0xff]  ;;  %v50_v42 = vld [vmem:[#allocation2 + $0x30] sm:$0xff] }
  0x2a   :  { %502 = vmatprep.subr.bf16.mxu1 %v540_v13  ;;  %v49_v33 = vld [vmem:[#allocation2 + $0x28] sm:$0xff]  ;;  %v48_v38 = vld [vmem:[#allocation2 + $0x20] sm:$0xff]  ;;  %v54_v43 = vpack.c.bf16 %v50_v42, %v46_v41  ;;  %392 = vmatprep.mubr.bf16.mxu1 %v55_v39 }
  0x2b   :  { %v53_v35 = vpack.c.bf16 %v49_v33, %v45_v32  ;;  %v52_v40 = vpack.c.bf16 %v48_v38, %v44_v37  ;;  %v441_v46 = vld [vmem:[%s676_s2] ss:$0 sm:$0xff]  ;;  %s639_s2 = smov [#allocation7]  }
  0x2c   :  { %481 = vmatpush3.bf16.msra.mxu0 %v541_v14  ;;  %s428_s26 = sshll.u32 %s639_s2, 4  ;;  %s429_s26 = int_to_ptr.vmem [resolvable:$true] %s428_s26 }
  0x2d   :  { %503 = vmatpush3.bf16.msra.mxu1 %v542_v15  ;;  %482 = vmatprep.subr.bf16.mxu0 %v543_v16  ;;  %s607_s27 = scalar_lea.vmem %s429_s26, 256  ;;  %p612_p11 = scmp.lt.s32.totalorder %s429_s26, %s429_s26 }
  0x2e   :  { %504 = vmatprep.subr.bf16.mxu1 %v544_v17  ;;  %351 = vmatprep.mubr.bf16.mxu0 %v53_v35  ;;  %p608_p10 = scmp.ne.s32.totalorder %s429_s26, %s607_s27  ;;  %p613_p12 = scmp.lt.s32.totalorder %s607_s27, %s607_s27 }
  0x30   :  { %483 = vmatpush3.bf16.msra.mxu0 %v545_v18  ;;  %p614_p13 = por %p613_p12, %p612_p11 }
  0x31   :  { %505 = vmatpush3.bf16.msra.mxu1 %v546_v19  ;;  %484 = vmatprep.subr.bf16.mxu0 %v547_v20 }
  0x32   :  { %506 = vmatprep.subr.bf16.mxu1 %v548_v21  ;;  %p615_p0 = pnand %p614_p13, %p608_p10 }
  0x34   :  { %485 = vmatpush3.bf16.msra.mxu0 %v549_v22 }
  0x35   :  { %507 = vmatpush3.bf16.msra.mxu1 %v550_v23  ;;  %486 = vmatprep.subr.bf16.mxu0 %v551_v24 }
  0x36   :  { %508 = vmatprep.subr.bf16.mxu1 %v552_v25 }
  0x38   :  { %487 = vmatpush3.bf16.msra.mxu0 %v553_v26 }
  0x39   :  { %509 = vmatpush3.bf16.msra.mxu1 %v554_v27  ;;  %488 = vmatprep.subr.bf16.mxu0 %v555_v28 }
  0x3a   :  { %510 = vmatprep.subr.bf16.mxu1 %v556_v29 }
  0x3c   :  { %489 = vmatpush3.bf16.msra.mxu0 %v557_v30 }
  0x3d   :  { %511 = vmatpush3.bf16.msra.mxu1 %v558_v31 }
  0x3f   :  { %352 = vmatmul.mubr.bf16.vlgmr.msra.gmra.mxu0 %v52_v40 }
  0x40   :  { %393 = vmatmul.mubr.bf16.vlgmr.msra.gmra.mxu1 %v54_v43 }
  0xff   :  { %v490_v44 = vpop.f32.mrf.mxu0 }
 0x100   :  { %v512_v45 = vpop.f32.mrf.mxu1 }
 0x101   :  { %v491_v47 = vpop.f32.mrf.mxu0 }
 0x102   :  { %v492_v48 = vadd.f32 %v491_v47, %v490_v44  ;;  %v513_v49 = vpop.f32.mrf.mxu1 }
 0x103   :  { %v493_v50 = vpop.f32.mrf.mxu0  ;;  %v514_v52 = vadd.f32 %v513_v49, %v512_v45 }
 0x104   :  { %v354_v51 = vadd.f32 %v492_v48, %v441_v46  ;;  %v515_v53 = vpop.f32.mrf.mxu1 }
 0x105   :  { %v494_v54 = vpop.f32.mrf.mxu0 }
 0x106   :  { %v495_v55 = vadd.f32 %v494_v54, %v493_v50  ;;  %v516_v56 = vpop.f32.mrf.mxu1  ;;  %v395_v57 = vadd.f32 %v514_v52, %v354_v51 }
 0x107   :  { %v517_v59 = vadd.f32 %v516_v56, %v515_v53 }
 0x108   :  { %v357_v58 = vadd.f32 %v495_v55, %v441_v46  ;;  %401 = vmax.xlane.f32.xlu0 %v395_v57 }
 0x10a   :  { %v398_v60 = vadd.f32 %v517_v59, %v357_v58 }
 0x10c   :  { %403 = vmax.xlane.f32.xlu0 %v398_v60 }
 0x191   :  { %v402_v61 = vpop.xlane.xlu0 %401 }
 0x192   :  { %v405_v62 = vsub.f32 %v395_v57, %v402_v61 }
 0x194   :  { %v407_v63 = vmul.f32 1.442695, %v405_v62 }
 0x195   :  { %v404_v0 = vpop.xlane.xlu0 %403 }
 0x196   :  { %v406_v1 = vsub.f32 %v398_v60, %v404_v0  ;;  %559 = vpow2.f32 %v407_v63 }
 0x198   :  { %v409_v2 = vmul.f32 1.442695, %v406_v1 }
 0x19a   :  { %561 = vpow2.f32 %v409_v2 }
 0x1a3   :  { %v560_v3 = vpop.eup %559 }
 0x1a4   :  { %411 = vadd.xlane.f32.xlu1 %v560_v3 }
 0x1a7   :  { %v562_v4 = vpop.eup %561 }
 0x1a8   :  { %413 = vadd.xlane.f32.xlu1 %v562_v4 }
 0x22d   :  { %v412_v5 = vpop.xlane.xlu1 %411 }
 0x22e   :  { %563 = vlog2.f32 %v412_v5 }
 0x231   :  { %v414_v6 = vpop.xlane.xlu1 %413 }
 0x232   :  { %565 = vlog2.f32 %v414_v6 }
 0x23b   :  { %v564_v7 = vpop.eup %563 }
 0x23c   :  { %v416_v8 = vmul.f32 0.6931472, %v564_v7 }
 0x23e   :  { %v419_v9 = vsub.f32 %v405_v62, %v416_v8 }
 0x23f   :  { %v566_v10 = vpop.eup %565 }
 0x240   :  { %421 = vst [vmem:[#allocation7] sm:$0xff] %v419_v9  ;;  %v418_v11 = vmul.f32 0.6931472, %v566_v10 }
 0x242   :  { %v420_v12 = vsub.f32 %v406_v1, %v418_v11 }
 0x244   :  { %422 = vst [vmem:[#allocation7 + $0x8] sm:$0xff] %v420_v12 }
 0x245   :  { %618 = shalt.err (!%p615_p0)
}
 0x246   :  { %s640_s28 = smov 128   ;;  %s641_s29 = smov 8  }
 0x247   :  { %434 = dma.vmem_to_hbm [thread:$0]  %s429_s26, 256, %s677_s3, [#allocation4], %s640_s28, %s640_s28, %s641_s29  }
 0x248   :  { %631 = dma.done.wait [#allocation4], 256  }
 0x249   :  { %632 = vsyncadd [#allocation4], 4294967040 }
 0x24a   :  { %438 = vsyncpa [#allocation3], 1 }
 0x24b   :  { %439 = vsyncpa [#allocation6], 1 }
 0x24c   :  { %440 = vsyncpa [#allocation4], 1 }

</bundles_post_ra>
